<compile_context>
chip_gen: v5e
topology: v5e:2x2
jax: 0.10.0
libtpu: 0.0.40
codegen_flags: <defaults>
</compile_context>

<pallas_src>
import numpy as np
import jax
import jax.numpy as jnp
from jax import lax
from jax.experimental import pallas as pl
from jax.experimental.pallas import tpu as pltpu

# --------------------------- "hps" configuration ----------------------------
SENT_MAX_LEN = 8      # hps.sent_max_len  -> H
WORD_EMB_DIM = 32     # hps.word_emb_dim  -> W
IN_CHANNEL   = 1      # enc_conv_input.unsqueeze(1) => single input channel
DEPTH        = 4      # ASPP depth
VOCAB        = 20
BATCH        = 2

H, W = SENT_MAX_LEN, WORD_EMB_DIM
HW   = H * W                   # 256 (2 x 128 lanes)
PAD  = 18                      # largest dilation; one shared zero-pad
DILS = (6, 12, 18)

T_TAPS = 2 + 9 * len(DILS) + 1   # mean + identity + 27 shifted + ones = 30
T_PAD  = 32                      # sublane-friendly padded tap count
D_PAD  = 8                       # sublane-friendly padded output-channel count


def get_sinusoid_encoding_table(n_position, d_hid, padding_idx=None):
    pos = np.arange(n_position, dtype=np.float64)[:, None]
    dim = np.arange(d_hid, dtype=np.float64)[None, :]
    angle = pos / np.power(10000.0, 2.0 * (dim // 2) / d_hid)
    table = np.zeros((n_position, d_hid), dtype=np.float64)
    table[:, 0::2] = np.sin(angle[:, 0::2])
    table[:, 1::2] = np.cos(angle[:, 1::2])
    if padding_idx is not None:
        table[padding_idx] = 0.0
    return jnp.asarray(table, dtype=jnp.float32)


# ------------------------------- Pallas kernel ------------------------------
def aspp_kernel(taps_ref, w_ref, out_ref):
    # [D_PAD, T_PAD] x [T_PAD, N*HW] -> [D_PAD, N*HW]   (single MXU contraction)
    out_ref[...] = jnp.dot(w_ref[...], taps_ref[...],
                           preferred_element_type=jnp.float32)


def aspp_pallas(taps, w_eff_t):
    t, np_lanes = taps.shape                       # (32, N*HW)
    dp = w_eff_t.shape[0]                          # 8
    return pl.pallas_call(
        aspp_kernel,
        out_shape=jax.ShapeDtypeStruct((dp, np_lanes), jnp.float32),
        grid=(1,),                                 # whole problem in one step
        in_specs=[
            pl.BlockSpec((t, np_lanes), lambda i: (0, 0)),   # taps (lane-dense)
            pl.BlockSpec((dp, t), lambda i: (0, 0)),         # packed folded weights
        ],
        out_specs=pl.BlockSpec((dp, np_lanes), lambda i: (0, 0)),
        compiler_params=pltpu.CompilerParams(
            dimension_semantics=("arbitrary",)),
    )(taps, w_eff_t)


# ------------------------------ JAX glue -------------------------------------
def embed(x_ids, word_table, pos_table):
    # (x != 0).sum(dim=1); positions 1..sent_len then 0-padding (as in PyTorch)
    sent_len = jnp.sum((x_ids != 0).astype(jnp.int32), axis=1)
    # TODO(synk): the vocab / position embedding gathers stay in JAX glue; a
    # dynamic vocab gather has no clean single-kernel Pallas TPU expression
    # at these sizes.
    we = word_table[x_ids]                                         # [N, H, W]
    pos_ids = jnp.where(jnp.arange(H)[None, :] < sent_len[:, None],
                        jnp.arange(1, H + 1)[None, :], 0)
    pe = pos_table[pos_ids]                                        # [N, H, W]
    return we + pe                                                 # [N, H, W]


def build_taps(x):
    """im2col-style tap slab [T_PAD, N*HW]; tap axis in sublanes, positions in lanes."""
    n = x.shape[0]
    xp = jnp.pad(x, ((0, 0), (PAD, PAD), (PAD, PAD)))              # [N, H+36, W+36]
    taps = [jnp.broadcast_to(jnp.mean(x, axis=(1, 2), keepdims=True), (n, H, W)),
            x]
    for dil in DILS:
        for kh in range(3):
            for kw in range(3):
                r0 = PAD + (kh - 1) * dil
                c0 = PAD + (kw - 1) * dil
                taps.append(xp[:, r0:r0 + H, c0:c0 + W])
    taps.append(jnp.ones((n, H, W), jnp.float32))
    t = jnp.stack(taps, axis=0).reshape(T_TAPS, n * HW)            # [30, N*HW]
    return jnp.pad(t, ((0, T_PAD - T_TAPS), (0, 0)))               # [32, N*HW]


def fold_weights(params):
    """Fold conv_1x1_output through every branch into one [D_PAD, T_PAD] weight."""
    (w_img, b_img, w1, b1, w6, b6, w12, b12, w18, b18, wout, bout) = params
    d = DEPTH
    bias_row = (bout
                + b_img @ wout[0 * d:1 * d] + b1 @ wout[1 * d:2 * d]
                + b6 @ wout[2 * d:3 * d] + b12 @ wout[3 * d:4 * d]
                + b18 @ wout[4 * d:5 * d])
    w_eff = jnp.concatenate([
        (w_img @ wout[0 * d:1 * d])[None, :],     # tap 0: mean plane
        (w1 @ wout[1 * d:2 * d])[None, :],        # tap 1: identity plane
        w6 @ wout[2 * d:3 * d],                   # taps 2..10  (dil 6)
        w12 @ wout[3 * d:4 * d],                  # taps 11..19 (dil 12)
        w18 @ wout[4 * d:5 * d],                  # taps 20..28 (dil 18)
        bias_row[None, :],                        # tap 29: ones (all biases)
    ], axis=0)                                    # [30, D]
    w_eff = jnp.pad(w_eff, ((0, T_PAD - T_TAPS), (0, 0)))          # [32, D]
    return jnp.pad(w_eff.T, ((0, D_PAD - DEPTH), (0, 0)))          # [8, 32]


def aspp_forward(x_ids, word_table, pos_table, params):
    n = x_ids.shape[0]
    x = embed(x_ids, word_table, pos_table)                        # [N, H, W]
    taps = build_taps(x)                                           # [32, N*HW]
    w_eff_t = fold_weights(params)                                 # [8, 32]
    out_flat = aspp_pallas(taps, w_eff_t)                          # [8, N*HW]
    out = out_flat[:DEPTH].reshape(DEPTH, n, H, W)
    return jnp.transpose(out, (1, 0, 2, 3))                        # [N, D, H, W]


# --------------------------- pure-JAX reference -------------------------------
def aspp_reference(x_ids, word_table, pos_table, params):
    (w_img, b_img, w1, b1, w6, b6, w12, b12, w18, b18, wout, bout) = params
    sent_len = jnp.sum((x_ids != 0).astype(jnp.int32), axis=1)
    we = word_table[x_ids]
    pos_ids = jnp.where(jnp.arange(H)[None, :] < sent_len[:, None],
                        jnp.arange(1, H + 1)[None, :], 0)
    pe = pos_table[pos_ids]
    xin = (we + pe)[:, None, :, :]                                 # [N,1,H,W]

    mean = jnp.mean(xin, axis=(2, 3), keepdims=True)               # [N,1,1,1]
    img = mean * w_img[None, :, None, None] + b_img[None, :, None, None]
    img = jnp.broadcast_to(img, (x_ids.shape[0], DEPTH, H, W))

    a1 = xin * w1[None, :, None, None] + b1[None, :, None, None]

    def dil_conv(w9, b, dil):
        k = jnp.transpose(w9).reshape(DEPTH, 3, 3)[:, None, :, :]  # [D,1,3,3]
        y = lax.conv_general_dilated(
            xin, k, window_strides=(1, 1),
            padding=((dil, dil), (dil, dil)),
            rhs_dilation=(dil, dil),
            dimension_numbers=("NCHW", "OIHW", "NCHW"))
        return y + b[None, :, None, None]

    a6 = dil_conv(w6, b6, 6)
    a12 = dil_conv(w12, b12, 12)
    a18 = dil_conv(w18, b18, 18)

    stack = jnp.concatenate([img, a1, a6, a12, a18], axis=1)       # [N,5D,H,W]
    out = jnp.einsum("nchw,cd->ndhw", stack, wout) + bout[None, :, None, None]
    return out


if __name__ == "__main__":
    key = jax.random.PRNGKey(0)
    ks = jax.random.split(key, 16)

    def p(k, shape, scale=0.1):
        return scale * jax.random.normal(k, shape, dtype=jnp.float32)

    word_table = p(ks[0], (VOCAB, WORD_EMB_DIM), 0.5)               # self.embed
    pos_table = get_sinusoid_encoding_table(SENT_MAX_LEN + 1, WORD_EMB_DIM,
                                            padding_idx=0)          # position_embedding

    params = (
        p(ks[1], (DEPTH,)), p(ks[2], (DEPTH,)),              # self.conv (1x1 on pooled feat)
        p(ks[3], (DEPTH,)), p(ks[4], (DEPTH,)),              # convs[0]: 1x1
        p(ks[5], (9, DEPTH)), p(ks[6], (DEPTH,)),            # convs[1]: 3x3, dilation 6
        p(ks[7], (9, DEPTH)), p(ks[8], (DEPTH,)),            # convs[2]: 3x3, dilation 12
        p(ks[9], (9, DEPTH)), p(ks[10], (DEPTH,)),           # convs[3]: 3x3, dilation 18
        p(ks[11], (5 * DEPTH, DEPTH)), p(ks[12], (DEPTH,)),  # conv_1x1_output
    )

    # token ids with trailing padding zeros
    x_ids = jax.random.randint(ks[13], (BATCH, SENT_MAX_LEN), 1, VOCAB)
    x_ids = x_ids.at[0, 6:].set(0)
    x_ids = x_ids.at[1, 7:].set(0)

    out = jax.block_until_ready(
        jax.jit(aspp_forward)(x_ids, word_table, pos_table, params))

    ref = jax.block_until_ready(aspp_reference(x_ids, word_table, pos_table, params))
    assert out.shape == (BATCH, DEPTH, H, W), out.shape
    if not np.allclose(np.asarray(out), np.asarray(ref), rtol=2e-3, atol=2e-3):
        raise AssertionError("Pallas ASPP output mismatch vs JAX reference")
    print("KERNEL_OK")
</pallas_src>

<mosaic_0001>
module attributes {stable_mosaic.version = 11 : i64} {
  func.func @aspp_kernel(%arg0: i32, %arg1: memref<32x512xf32, #tpu.memory_space<vmem>>, %arg2: memref<8x32xf32, #tpu.memory_space<vmem>>, %arg3: memref<8x512xf32, #tpu.memory_space<vmem>>) attributes {dimension_semantics = [#tpu.dimension_semantics<arbitrary>], iteration_bounds = array<i64: 1>, scalar_prefetch = 0 : i64, scratch_operands = 0 : i64, tpu.core_type = #tpu.core_type<tc>, window_params = [{pipeline_mode = #tpu.pipeline_mode<synchronous>, transform_indices = @transform_0, window_bounds = array<i64: 32, 512>}, {pipeline_mode = #tpu.pipeline_mode<synchronous>, transform_indices = @transform_1, window_bounds = array<i64: 8, 32>}, {pipeline_mode = #tpu.pipeline_mode<synchronous>, transform_indices = @transform_2, window_bounds = array<i64: 8, 512>}]} {
    %c0 = arith.constant 0 : index
    %c0_0 = arith.constant 0 : index
    %0 = vector.load %arg2[%c0, %c0_0] : memref<8x32xf32, #tpu.memory_space<vmem>>, vector<8x32xf32>
    %c0_1 = arith.constant 0 : index
    %c0_2 = arith.constant 0 : index
    %1 = vector.load %arg1[%c0_1, %c0_2] : memref<32x512xf32, #tpu.memory_space<vmem>>, vector<32x512xf32>
    %cst = arith.constant dense<0.000000e+00> : vector<8x512xf32>
    %2 = tpu.matmul %0, %1, %cst {dimension_numbers = #tpu.dot_dimension_numbers<[1], [0], [0], [1], [0, 0, 1, 1], [], []>} : vector<8x32xf32>, vector<32x512xf32>, vector<8x512xf32> -> vector<8x512xf32>
    %c0_3 = arith.constant 0 : index
    %c0_4 = arith.constant 0 : index
    %3 = vector.load %arg3[%c0_3, %c0_4] : memref<8x512xf32, #tpu.memory_space<vmem>>, vector<8x512xf32>
    tpu.vector_store %arg3[%c0_3, %c0_4], %2 {strides = array<i32>} : memref<8x512xf32, #tpu.memory_space<vmem>>, vector<8x512xf32>,
    return
  }
  func.func @transform_0(%arg0: i32) -> (i32, i32) {
    %c0_i32 = arith.constant 0 : i32
    %c0_i32_0 = arith.constant 0 : i32
    %c0_i32_1 = arith.constant 0 : i32
    return %c0_i32, %c0_i32_0 : i32, i32
  }
  func.func @transform_1(%arg0: i32) -> (i32, i32) {
    %c0_i32 = arith.constant 0 : i32
    %c0_i32_0 = arith.constant 0 : i32
    %c0_i32_1 = arith.constant 0 : i32
    return %c0_i32, %c0_i32_0 : i32, i32
  }
  func.func @transform_2(%arg0: i32) -> (i32, i32) {
    %c0_i32 = arith.constant 0 : i32
    %c0_i32_0 = arith.constant 0 : i32
    %c0_i32_1 = arith.constant 0 : i32
    return %c0_i32, %c0_i32_0 : i32, i32
  }
}

</mosaic_0001>

<bundles_post_ra>
// kernel: aspp_forward.1
= control target key start
LH: loop header
LB: loop body
LE: loop exit
PB: predicated region body
PF: predicated region fallthrough
CT: control target
= control target key end

     0   :  { %vm28_vm0 = vcmask 261120   ;;  %s206_s0 = inlined_call_operand.vmem [shape: f32[32,512], index: 0, kind: input, shape index: {}]   ;;  %s207_s1 = inlined_call_operand.vmem [shape: f32[8,32], index: 1, kind: input, shape index: {}]   ;;  %s208_s2 = inlined_call_operand.vmem [shape: f32[8,512], index: 2, kind: output, shape index: {}]  }
   0x1   :  { %v26_v0 = vld [vmem:[%s206_s0 + $0x70] sm:$0xff]  ;;  %v27_v1 = vld [vmem:[%s206_s0 + $0x78] sm:$0xff]  ;;  %v24_v6 = vld [vmem:[%s206_s0 + $0x60] sm:$0xff] }
   0x2   :  { %v22_v2 = vld [vmem:[%s206_s0 + $0x50] sm:$0xff]  ;;  %84 = vmatpush.msra.mxu2 %v26_v0  ;;  %104 = vmatpush.msra.mxu3 %v27_v1  ;;  %v23_v3 = vld [vmem:[%s206_s0 + $0x58] sm:$0xff]  ;;  %v25_v7 = vld [vmem:[%s206_s0 + $0x68] sm:$0xff] }
   0x3   :  { %v18_v4 = vld [vmem:[%s206_s0 + $0x30] sm:$0xff]  ;;  %v19_v5 = vld [vmem:[%s206_s0 + $0x38] sm:$0xff]  ;;  %v20_v8 = vld [vmem:[%s206_s0 + $0x40] sm:$0xff]  ;;  %44 = vmatpush.msra.mxu0 %v24_v6  ;;  %64 = vmatpush.msra.mxu1 %v25_v7 }
   0x4   :  { %85 = vmatpush.msra.mxu2 %v22_v2  ;;  %105 = vmatpush.msra.mxu3 %v23_v3  ;;  %v14_v9 = vld [vmem:[%s206_s0 + $0x10] sm:$0xff]  ;;  %v15_v10 = vld [vmem:[%s206_s0 + $0x18] sm:$0xff]  ;;  %v21_v11 = vld [vmem:[%s206_s0 + $0x48] sm:$0xff] }
   0x5   :  { %v11_v12 = vld [vmem:[%s207_s1] sm:$0xff]  ;;  %45 = vmatpush.msra.mxu0 %v20_v8  ;;  %65 = vmatpush.msra.mxu1 %v21_v11  ;;  %v17_v14 = vld [vmem:[%s206_s0 + $0x28] sm:$0xff] }
   0x6   :  { %86 = vmatpush.msra.mxu2 %v18_v4  ;;  %106 = vmatpush.msra.mxu3 %v19_v5  ;;  %v16_v13 = vld [vmem:[%s206_s0 + $0x20] sm:$0xff]  ;;  %v13_v16 = vld [vmem:[%s206_s0 + $0x8] sm:$0xff] }
   0x7   :  { %v12_v15 = vld [vmem:[%s206_s0] sm:$0xff]  ;;  %46 = vmatpush.msra.mxu0 %v16_v13  ;;  %66 = vmatpush.msra.mxu1 %v17_v14 }
   0x8   :  { %87 = vmatpush.msra.mxu2 %v14_v9  ;;  %107 = vmatpush.msra.mxu3 %v15_v10 }
   0x9   :  { %122 = vmatmul.msk.f32.vlgmr.msra.gmra.mxu2 %vm28_vm0, %v11_v12  ;;  %123 = vmatmul.msk.f32.vlgmr.msra.gmra.mxu3 %vm28_vm0, %v11_v12 }
   0xa   :  { %47 = vmatpush.msra.mxu0 %v12_v15  ;;  %67 = vmatpush.msra.mxu1 %v13_v16 }
   0xb   :  { %120 = vmatmul.msk.f32.vlgmr.msra.gmra.mxu0 %vm28_vm0, %v11_v12  ;;  %121 = vmatmul.msk.f32.vlgmr.msra.gmra.mxu1 %vm28_vm0, %v11_v12 }
  0x88   :  { %v49_v17 = vpop.f32.mrf.mxu0  ;;  %v69_v18 = vpop.f32.mrf.mxu1 }
  0x89   :  { %112 = vst [vmem:[%s208_s2] sm:$0xff] %v49_v17 }
  0x8a   :  { %113 = vst [vmem:[%s208_s2 + $0x8] sm:$0xff] %v69_v18 }
  0x8c   :  { %v89_v19 = vpop.f32.mrf.mxu2  ;;  %v109_v20 = vpop.f32.mrf.mxu3 }
  0x8d   :  { %114 = vst [vmem:[%s208_s2 + $0x10] sm:$0xff] %v89_v19 }
  0x8e   :  { %115 = vst [vmem:[%s208_s2 + $0x18] sm:$0xff] %v109_v20 }

</bundles_post_ra>
